<compile_context>
chip_gen: v5e
topology: v5e:2x2
jax: 0.10.0
libtpu: 0.0.40
codegen_flags: <defaults>
</compile_context>

<pallas_src>
import jax
import jax.numpy as jnp
from jax.experimental import pallas as pl
from jax.experimental.pallas import tpu as pltpu

_LANES = 128            # vreg lane width
_SUBLANES = 8           # vreg sublane count (f32)
_MAX_TILE_ROWS = 2048   # 2048 * 128 * 4 B = 1 MiB per buffer
                        # -> ~4 MiB with in+out double buffering (fits v7x
                        #    32 MiB scoped / 64 MiB physical VMEM easily)


def _relu_kernel(x_ref, o_ref):
    # Pure VPU elementwise op on a lane-dense (tile_rows, 128) tile.
    o_ref[...] = jnp.maximum(x_ref[...], jnp.zeros_like(x_ref[...]))


def perceptron_forward(x, weight=None, bias=None):
    """Forward of the reference Perceptron module.

    x: (B, F) float array (F == 1 for nn.Linear(1, 1)).
    weight / bias are accepted for interface parity with the PyTorch module
    but are intentionally unused: the reference forward discards the fc
    output and returns relu(x).
    """
    del weight, bias  # dead in the reference forward (fc output is discarded)

    orig_shape = x.shape
    n = int(x.size)

    # --- repack to a lane-dense (rows_padded, 128) slab ------------------
    rows = -(-n // _LANES)                                          # ceil(n/128)
    rows_aligned = ((rows + _SUBLANES - 1) // _SUBLANES) * _SUBLANES  # mult of 8
    tile_rows = min(_MAX_TILE_ROWS, rows_aligned)
    rows_padded = -(-rows_aligned // tile_rows) * tile_rows         # mult of tile
    n_padded = rows_padded * _LANES

    x_flat = x.reshape(-1)
    x_slab = jnp.pad(x_flat, (0, n_padded - n)).reshape(rows_padded, _LANES)

    grid = (rows_padded // tile_rows,)

    out_slab = pl.pallas_call(
        _relu_kernel,
        out_shape=jax.ShapeDtypeStruct((rows_padded, _LANES), x.dtype),
        grid_spec=pl.GridSpec(
            grid=grid,
            in_specs=[pl.BlockSpec((tile_rows, _LANES), lambda i: (i, 0))],
            out_specs=pl.BlockSpec((tile_rows, _LANES), lambda i: (i, 0)),
        ),
        # padded slab is a temporary -> safe to donate as the output buffer
        input_output_aliases={0: 0},
        compiler_params=pltpu.CompilerParams(
            dimension_semantics=("parallel",),
        ),
    )(x_slab)

    return out_slab.reshape(-1)[:n].reshape(orig_shape)


if __name__ == "__main__":
    key = jax.random.PRNGKey(0)
    kx, kw, kb, kx2 = jax.random.split(key, 4)

    # Shapes consistent with nn.Linear(1, 1): (batch, in_features=1).
    B, F = 8, 1
    x = jax.random.normal(kx, (B, F), dtype=jnp.float32)

    # Module parameters exist but are dead in the reference forward;
    # constructed only for interface fidelity.
    weight = jax.random.uniform(kw, (1, 1), dtype=jnp.float32, minval=-1.0, maxval=1.0)
    bias = jax.random.uniform(kb, (1,), dtype=jnp.float32, minval=-1.0, maxval=1.0)

    out = jax.block_until_ready(perceptron_forward(x, weight, bias))

    ref = jnp.maximum(x, 0.0)  # reference semantics: relu(x), fc discarded
    assert out.shape == (B, F)
    assert out.dtype == jnp.float32
    assert jnp.allclose(out, ref, atol=1e-6), "mismatch vs reference relu(x)"

    # Second check with a batch that does not divide the 128-lane slab,
    # exercising the pad/unpad path.
    B2 = 300
    x2 = jax.random.normal(kx2, (B2, F), dtype=jnp.float32)
    out2 = jax.block_until_ready(perceptron_forward(x2, weight, bias))
    assert out2.shape == (B2, F)
    assert jnp.allclose(out2, jnp.maximum(x2, 0.0), atol=1e-6)

    print("KERNEL_OK")
</pallas_src>

<mosaic_0001>
module attributes {stable_mosaic.version = 11 : i64} {
  func.func @_relu_kernel(%arg0: i32, %arg1: memref<8x128xf32, #tpu.memory_space<vmem>>, %arg2: memref<8x128xf32, #tpu.memory_space<vmem>>) attributes {dimension_semantics = [#tpu.dimension_semantics<parallel>], iteration_bounds = array<i64: 1>, scalar_prefetch = 0 : i64, scratch_operands = 0 : i64, tpu.core_type = #tpu.core_type<tc>, window_params = [{transform_indices = @transform_0, window_bounds = array<i64: 8, 128>}, {transform_indices = @transform_1, window_bounds = array<i64: 8, 128>}]} {
    %c0 = arith.constant 0 : index
    %c0_0 = arith.constant 0 : index
    %0 = vector.load %arg1[%c0, %c0_0] : memref<8x128xf32, #tpu.memory_space<vmem>>, vector<8x128xf32>
    %cst = arith.constant 0.000000e+00 : f32
    %1 = vector.broadcast %cst : f32 to vector<8x128xf32>
    %2 = arith.maximumf %0, %1 : vector<8x128xf32>
    %c0_1 = arith.constant 0 : index
    %c0_2 = arith.constant 0 : index
    %3 = vector.load %arg2[%c0_1, %c0_2] : memref<8x128xf32, #tpu.memory_space<vmem>>, vector<8x128xf32>
    tpu.vector_store %arg2[%c0_1, %c0_2], %2 {strides = array<i32>} : memref<8x128xf32, #tpu.memory_space<vmem>>, vector<8x128xf32>,
    return
  }
  func.func @transform_0(%arg0: i32) -> (i32, i32) {
    %c0_i32 = arith.constant 0 : i32
    %c0_i32_0 = arith.constant 0 : i32
    return %arg0, %c0_i32 : i32, i32
  }
  func.func @transform_1(%arg0: i32) -> (i32, i32) {
    %c0_i32 = arith.constant 0 : i32
    %c0_i32_0 = arith.constant 0 : i32
    return %arg0, %c0_i32 : i32, i32
  }
}

</mosaic_0001>

<bundles_post_ra>
// kernel: tpu_custom_call.1
= control target key start
LH: loop header
LB: loop body
LE: loop exit
PB: predicated region body
PF: predicated region fallthrough
CT: control target
= control target key end

     0   :  { %6 = vsyncpa [#allocation3], 0  ;;  %s115_s0 = inlined_call_operand.hbm [shape: f32[8,128], index: 0, kind: input, shape index: {}, may-alias: {0,1}]   ;;  %s116_s1 = inlined_call_operand.hbm [shape: f32[8,128], index: 1, kind: output, shape index: {}, may-alias: {0,1}]  }
   0x1   :  { %7 = vsyncpa [#allocation4], 0  ;;  %s13_s8 = sshll.u32 %s115_s0, 4  ;;  %s97_s9 = smov [#allocation2]   ;;  %s14_s8 = int_to_ptr.hbm [resolvable:$true] %s13_s8 }
   0x2   :  { %s15_s10 = sshll.u32 %s97_s9, 4  ;;  %s16_s10 = int_to_ptr.vmem [resolvable:$true] %s15_s10 }
   0x3   :  { %18 = dma.hbm_to_vmem [thread:$0]  %s14_s8, 128, %s16_s10, [#allocation3]  }
   0x4   :  { %93 = dma.done.wait [#allocation3], 128  }
   0x5   :  { %94 = vsyncadd [#allocation3], 4294967168  ;;  %s98_s11 = smov [#allocation5]   ;;  %s33_s15 = sshll.u32 %s116_s1, 4  ;;  %v23_v0 = vld [vmem:[#allocation2] sm:$0xff]  ;;  %s34_s15 = int_to_ptr.hbm [resolvable:$true] %s33_s15 }
   0x6   :  { %s31_s12 = sshll.u32 %s98_s11, 4  ;;  %v24_v1 = vmax.f32 %v23_v0, 0.0  ;;  %s32_s12 = int_to_ptr.vmem [resolvable:$true] %s31_s12 }
   0x8   :  { %25 = vst [vmem:[#allocation5] sm:$0xff] %v24_v1 }
   0x9   :  { %36 = dma.vmem_to_hbm [thread:$0]  %s32_s12, 128, %s34_s15, [#allocation4]  }
   0xa   :  { %95 = dma.done.wait [#allocation4], 128  }
   0xb   :  { %96 = vsyncadd [#allocation4], 4294967168 }
   0xc   :  { %41 = vsyncpa [#allocation3], 1 }
   0xd   :  { %42 = vsyncpa [#allocation4], 1 }

</bundles_post_ra>
